<compile_context>
chip_gen: v7x
topology: tpu7x:2x2x1
jax: 0.10.0
libtpu: 0.0.40
codegen_flags: <defaults>
</compile_context>

<pallas_src>
import functools

import jax
import jax.numpy as jnp
from jax.experimental import pallas as pl
from jax.experimental.pallas import tpu as pltpu


NEG_SLOPE = 0.01    # torch.nn.LeakyReLU default negative_slope
BN_EPS = 1e-5       # torch.nn.BatchNorm1d default eps
MAX_TB = 32768      # batch (lane) tile; 2 MiB f32 x-tile, double buffered -> ~5 MiB VMEM


def _leaky_relu(v):
    # single mul + max (cheaper on the VALU than cmp/select)
    return jnp.maximum(v, NEG_SLOPE * v)


def mlp_kernel(x_ref,
               w1_ref, c1_ref,
               w2_ref, c2_ref,
               w3_ref, c3_ref,
               w4_ref, c4_ref,
               o_ref):
    """Fused forward in transposed layout (features on sublanes, batch on lanes).

    x_ref : (dim_in, TB)     compute dtype
    w*_ref: (d_out, d_in)    compute dtype, BN scale pre-folded
    c*_ref: (d_out, 1)       f32, bias + BN shift pre-folded
    o_ref : (dim_out, TB)    f32
    """
    cdt = w1_ref.dtype
    h = x_ref[...]

    h = jnp.dot(w1_ref[...], h, preferred_element_type=jnp.float32) + c1_ref[...]
    h = _leaky_relu(h).astype(cdt)

    h = jnp.dot(w2_ref[...], h, preferred_element_type=jnp.float32) + c2_ref[...]
    h = _leaky_relu(h).astype(cdt)

    h = jnp.dot(w3_ref[...], h, preferred_element_type=jnp.float32) + c3_ref[...]
    h = _leaky_relu(h).astype(cdt)

    o_ref[...] = jnp.dot(w4_ref[...], h, preferred_element_type=jnp.float32) + c4_ref[...]


def _cdiv(a, b):
    return -(-a // b)


def _round_up(v, m):
    return _cdiv(v, m) * m


def _fold_params(params, compute_dtype):
    """Fold eval-mode BatchNorm into the preceding Linear's weights/biases."""
    flat = []
    for li in (1, 2, 3):
        w = params[f"w{li}"]                       # (out, in), torch layout
        b = params[f"b{li}"]                       # (out,)
        s = params[f"g{li}"] * jax.lax.rsqrt(params[f"rv{li}"] + BN_EPS)
        w_f = (w * s[:, None]).astype(compute_dtype)
        c = ((b - params[f"rm{li}"]) * s + params[f"be{li}"])[:, None].astype(jnp.float32)
        flat += [w_f, c]
    flat += [params["w4"].astype(compute_dtype),
             params["b4"][:, None].astype(jnp.float32)]
    return flat


@functools.partial(jax.jit, static_argnames=("compute_dtype",))
def mlp_forward(x, params, *, compute_dtype=jnp.float32):
    n, dim_in = x.shape
    dim_out = params["w4"].shape[0]
    flat = _fold_params(params, compute_dtype)

    # Balanced lane-tile selection: choose the number of tiles first, then an even
    # (128-aligned) tile size, so batch padding waste stays tiny for any n.
    n128 = _round_up(max(n, 1), 128)
    ntiles = _cdiv(n128, MAX_TB)
    tb = _round_up(_cdiv(n128, ntiles), 128)
    n_pad = ntiles * tb

    # Batch-on-lanes: columns are samples.  Transpose + cast + pad fuse into one XLA copy.
    x_t = jnp.pad(x.T.astype(compute_dtype), ((0, 0), (0, n_pad - n)))

    grid = (ntiles,)
    in_specs = [pl.BlockSpec((dim_in, tb), lambda i: (0, i))]
    # Params: full-array blocks, same block every grid step -> stay VMEM-resident.
    in_specs += [pl.BlockSpec(p.shape, lambda i: (0, 0)) for p in flat]
    out_spec = pl.BlockSpec((dim_out, tb), lambda i: (0, i))

    # Advisory cost estimate (tiny FLOPs; HBM-read bound on x at large batch).
    dims = [dim_in] + [params[f"w{l}"].shape[0] for l in (1, 2, 3, 4)]
    flops = 2 * n_pad * sum(a * b for a, b in zip(dims[:-1], dims[1:]))
    bytes_accessed = (x_t.size * x_t.dtype.itemsize
                      + n_pad * dim_out * 4
                      + sum(int(p.size) * p.dtype.itemsize for p in flat))

    out_t = pl.pallas_call(
        mlp_kernel,
        out_shape=jax.ShapeDtypeStruct((dim_out, n_pad), jnp.float32),
        grid=grid,
        in_specs=in_specs,
        out_specs=out_spec,
        compiler_params=pltpu.CompilerParams(
            dimension_semantics=("parallel",)),   # megacore on v7x; no-op on v5e/v6e
        cost_estimate=pl.CostEstimate(flops=flops, transcendentals=0,
                                      bytes_accessed=bytes_accessed),
    )(x_t, *flat)

    return out_t[:, :n].T


def init_params(key, *, nbase, dim_in, dim_out, decoder=False):
    """Deterministic synthetic parameters in torch layout: w (out, in), b (out,)."""
    layers = [1, 2, 4]
    if decoder:
        layers = layers[::-1]
    d1, d2, d3 = nbase // layers[0], nbase // layers[1], nbase // layers[2]
    dims = [(dim_in, d1), (d1, d2), (d2, d3), (d3, dim_out)]

    keys = jax.random.split(key, 16)
    params = {}
    for li, (fi, fo) in enumerate(dims, start=1):
        bound = fi ** -0.5
        params[f"w{li}"] = jax.random.uniform(
            keys[4 * (li - 1) + 0], (fo, fi), jnp.float32, -bound, bound)
        params[f"b{li}"] = jax.random.uniform(
            keys[4 * (li - 1) + 1], (fo,), jnp.float32, -bound, bound)

    for bi, d in enumerate([d1, d2, d3], start=1):
        kg, kb, km, kv = jax.random.split(keys[12 + bi - 1], 4)
        params[f"g{bi}"] = 1.0 + 0.1 * jax.random.normal(kg, (d,), jnp.float32)
        params[f"be{bi}"] = 0.1 * jax.random.normal(kb, (d,), jnp.float32)
        params[f"rm{bi}"] = 0.1 * jax.random.normal(km, (d,), jnp.float32)
        params[f"rv{bi}"] = 1.0 + 0.1 * jax.random.uniform(kv, (d,), jnp.float32)
    return params


def mlp_reference(x, params):
    """Pure-JAX reference (torch semantics, eval-mode BatchNorm)."""
    def bn(h, i):
        s = params[f"g{i}"] / jnp.sqrt(params[f"rv{i}"] + BN_EPS)
        return (h - params[f"rm{i}"]) * s + params[f"be{i}"]

    h = _leaky_relu(bn(x @ params["w1"].T + params["b1"], 1))
    h = _leaky_relu(bn(h @ params["w2"].T + params["b2"], 2))
    h = _leaky_relu(bn(h @ params["w3"].T + params["b3"], 3))
    return h @ params["w4"].T + params["b4"]


if __name__ == "__main__":
    nbase, dim_in, dim_out, batch = 32, 16, 4, 8

    key = jax.random.PRNGKey(0)
    kx, kp = jax.random.split(key)
    x = jax.random.normal(kx, (batch, dim_in), jnp.float32)
    params = init_params(kp, nbase=nbase, dim_in=dim_in, dim_out=dim_out)

    ref = mlp_reference(x, params)

    # f32 path: tight correctness check.
    out = mlp_forward(x, params, compute_dtype=jnp.float32)
    jax.block_until_ready(out)
    assert out.shape == (batch, dim_out)
    assert jnp.allclose(out, ref, atol=1e-5, rtol=1e-5), "f32 mismatch vs reference"

    # bf16 fast path (halves HBM bytes for x/weights); loose sanity tolerance.
    out_bf16 = mlp_forward(x, params, compute_dtype=jnp.bfloat16)
    jax.block_until_ready(out_bf16)
    assert out_bf16.shape == (batch, dim_out)
    assert jnp.allclose(out_bf16, ref, atol=5e-2, rtol=5e-2), "bf16 mismatch vs reference"

    # Exercise a multi-tile, non-aligned batch to cover the grid/padding path.
    x_big = jax.random.normal(kx, (1000, dim_in), jnp.float32)
    out_big = mlp_forward(x_big, params, compute_dtype=jnp.float32)
    jax.block_until_ready(out_big)
    assert out_big.shape == (1000, dim_out)
    assert jnp.allclose(out_big, mlp_reference(x_big, params), atol=1e-5, rtol=1e-5), \
        "multi-tile mismatch vs reference"

    print("KERNEL_OK")
</pallas_src>

<mosaic_0001>
module attributes {stable_mosaic.version = 11 : i64} {
  func.func @mlp_kernel(%arg0: i32, %arg1: memref<16x128xf32, #tpu.memory_space<vmem>>, %arg2: memref<32x16xf32, #tpu.memory_space<vmem>>, %arg3: memref<32x1xf32, #tpu.memory_space<vmem>>, %arg4: memref<16x32xf32, #tpu.memory_space<vmem>>, %arg5: memref<16x1xf32, #tpu.memory_space<vmem>>, %arg6: memref<8x16xf32, #tpu.memory_space<vmem>>, %arg7: memref<8x1xf32, #tpu.memory_space<vmem>>, %arg8: memref<4x8xf32, #tpu.memory_space<vmem>>, %arg9: memref<4x1xf32, #tpu.memory_space<vmem>>, %arg10: memref<4x128xf32, #tpu.memory_space<vmem>>) attributes {dimension_semantics = [#tpu.dimension_semantics<parallel>], iteration_bounds = array<i64: 1>, scalar_prefetch = 0 : i64, scratch_operands = 0 : i64, tpu.core_type = #tpu.core_type<tc>, window_params = [{transform_indices = @transform_0, window_bounds = array<i64: 16, 128>}, {pipeline_mode = #tpu.pipeline_mode<synchronous>, transform_indices = @transform_1, window_bounds = array<i64: 32, 16>}, {pipeline_mode = #tpu.pipeline_mode<synchronous>, transform_indices = @transform_2, window_bounds = array<i64: 32, 1>}, {pipeline_mode = #tpu.pipeline_mode<synchronous>, transform_indices = @transform_3, window_bounds = array<i64: 16, 32>}, {pipeline_mode = #tpu.pipeline_mode<synchronous>, transform_indices = @transform_4, window_bounds = array<i64: 16, 1>}, {pipeline_mode = #tpu.pipeline_mode<synchronous>, transform_indices = @transform_5, window_bounds = array<i64: 8, 16>}, {pipeline_mode = #tpu.pipeline_mode<synchronous>, transform_indices = @transform_6, window_bounds = array<i64: 8, 1>}, {pipeline_mode = #tpu.pipeline_mode<synchronous>, transform_indices = @transform_7, window_bounds = array<i64: 4, 8>}, {pipeline_mode = #tpu.pipeline_mode<synchronous>, transform_indices = @transform_8, window_bounds = array<i64: 4, 1>}, {transform_indices = @transform_9, window_bounds = array<i64: 4, 128>}]} {
    %c0 = arith.constant 0 : index
    %c0_0 = arith.constant 0 : index
    %0 = vector.load %arg1[%c0, %c0_0] : memref<16x128xf32, #tpu.memory_space<vmem>>, vector<16x128xf32>
    %c0_1 = arith.constant 0 : index
    %c0_2 = arith.constant 0 : index
    %1 = vector.load %arg2[%c0_1, %c0_2] : memref<32x16xf32, #tpu.memory_space<vmem>>, vector<32x16xf32>
    %cst = arith.constant dense<0.000000e+00> : vector<32x128xf32>
    %2 = tpu.matmul %1, %0, %cst {dimension_numbers = #tpu.dot_dimension_numbers<[1], [0], [0], [1], [0, 0, 1, 1], [], []>} : vector<32x16xf32>, vector<16x128xf32>, vector<32x128xf32> -> vector<32x128xf32>
    %c0_3 = arith.constant 0 : index
    %c0_4 = arith.constant 0 : index
    %3 = vector.load %arg3[%c0_3, %c0_4] : memref<32x1xf32, #tpu.memory_space<vmem>>, vector<32x1xf32>
    %4 = vector.broadcast %3 : vector<32x1xf32> to vector<32x128xf32>
    %5 = arith.addf %2, %4 : vector<32x128xf32>
    %cst_5 = arith.constant 0.00999999977 : f32
    %6 = vector.broadcast %cst_5 : f32 to vector<32x128xf32>
    %7 = arith.mulf %6, %5 : vector<32x128xf32>
    %8 = arith.maximumf %5, %7 : vector<32x128xf32>
    %c0_6 = arith.constant 0 : index
    %c0_7 = arith.constant 0 : index
    %9 = vector.load %arg4[%c0_6, %c0_7] : memref<16x32xf32, #tpu.memory_space<vmem>>, vector<16x32xf32>
    %cst_8 = arith.constant dense<0.000000e+00> : vector<16x128xf32>
    %10 = tpu.matmul %9, %8, %cst_8 {dimension_numbers = #tpu.dot_dimension_numbers<[1], [0], [0], [1], [0, 0, 1, 1], [], []>} : vector<16x32xf32>, vector<32x128xf32>, vector<16x128xf32> -> vector<16x128xf32>
    %c0_9 = arith.constant 0 : index
    %c0_10 = arith.constant 0 : index
    %11 = vector.load %arg5[%c0_9, %c0_10] : memref<16x1xf32, #tpu.memory_space<vmem>>, vector<16x1xf32>
    %12 = vector.broadcast %11 : vector<16x1xf32> to vector<16x128xf32>
    %13 = arith.addf %10, %12 : vector<16x128xf32>
    %cst_11 = arith.constant 0.00999999977 : f32
    %14 = vector.broadcast %cst_11 : f32 to vector<16x128xf32>
    %15 = arith.mulf %14, %13 : vector<16x128xf32>
    %16 = arith.maximumf %13, %15 : vector<16x128xf32>
    %c0_12 = arith.constant 0 : index
    %c0_13 = arith.constant 0 : index
    %17 = vector.load %arg6[%c0_12, %c0_13] : memref<8x16xf32, #tpu.memory_space<vmem>>, vector<8x16xf32>
    %cst_14 = arith.constant dense<0.000000e+00> : vector<8x128xf32>
    %18 = tpu.matmul %17, %16, %cst_14 {dimension_numbers = #tpu.dot_dimension_numbers<[1], [0], [0], [1], [0, 0, 1, 1], [], []>} : vector<8x16xf32>, vector<16x128xf32>, vector<8x128xf32> -> vector<8x128xf32>
    %c0_15 = arith.constant 0 : index
    %c0_16 = arith.constant 0 : index
    %19 = vector.load %arg7[%c0_15, %c0_16] : memref<8x1xf32, #tpu.memory_space<vmem>>, vector<8x1xf32>
    %20 = vector.broadcast %19 : vector<8x1xf32> to vector<8x128xf32>
    %21 = arith.addf %18, %20 : vector<8x128xf32>
    %cst_17 = arith.constant 0.00999999977 : f32
    %22 = vector.broadcast %cst_17 : f32 to vector<8x128xf32>
    %23 = arith.mulf %22, %21 : vector<8x128xf32>
    %24 = arith.maximumf %21, %23 : vector<8x128xf32>
    %c0_18 = arith.constant 0 : index
    %c0_19 = arith.constant 0 : index
    %25 = vector.load %arg8[%c0_18, %c0_19] : memref<4x8xf32, #tpu.memory_space<vmem>>, vector<4x8xf32>
    %cst_20 = arith.constant dense<0.000000e+00> : vector<4x128xf32>
    %26 = tpu.matmul %25, %24, %cst_20 {dimension_numbers = #tpu.dot_dimension_numbers<[1], [0], [0], [1], [0, 0, 1, 1], [], []>} : vector<4x8xf32>, vector<8x128xf32>, vector<4x128xf32> -> vector<4x128xf32>
    %c0_21 = arith.constant 0 : index
    %c0_22 = arith.constant 0 : index
    %27 = vector.load %arg9[%c0_21, %c0_22] : memref<4x1xf32, #tpu.memory_space<vmem>>, vector<4x1xf32>
    %28 = vector.broadcast %27 : vector<4x1xf32> to vector<4x128xf32>
    %29 = arith.addf %26, %28 : vector<4x128xf32>
    %c0_23 = arith.constant 0 : index
    %c0_24 = arith.constant 0 : index
    %30 = vector.load %arg10[%c0_23, %c0_24] : memref<4x128xf32, #tpu.memory_space<vmem>>, vector<4x128xf32>
    tpu.vector_store %arg10[%c0_23, %c0_24], %29 {strides = array<i32>} : memref<4x128xf32, #tpu.memory_space<vmem>>, vector<4x128xf32>,
    return
  }
  func.func @transform_0(%arg0: i32) -> (i32, i32) {
    %c0_i32 = arith.constant 0 : i32
    %c0_i32_0 = arith.constant 0 : i32
    return %c0_i32, %arg0 : i32, i32
  }
  func.func @transform_1(%arg0: i32) -> (i32, i32) {
    %c0_i32 = arith.constant 0 : i32
    %c0_i32_0 = arith.constant 0 : i32
    %c0_i32_1 = arith.constant 0 : i32
    return %c0_i32, %c0_i32_0 : i32, i32
  }
  func.func @transform_2(%arg0: i32) -> (i32, i32) {
    %c0_i32 = arith.constant 0 : i32
    %c0_i32_0 = arith.constant 0 : i32
    %c0_i32_1 = arith.constant 0 : i32
    return %c0_i32, %c0_i32_0 : i32, i32
  }
  func.func @transform_3(%arg0: i32) -> (i32, i32) {
    %c0_i32 = arith.constant 0 : i32
    %c0_i32_0 = arith.constant 0 : i32
    %c0_i32_1 = arith.constant 0 : i32
    return %c0_i32, %c0_i32_0 : i32, i32
  }
  func.func @transform_4(%arg0: i32) -> (i32, i32) {
    %c0_i32 = arith.constant 0 : i32
    %c0_i32_0 = arith.constant 0 : i32
    %c0_i32_1 = arith.constant 0 : i32
    return %c0_i32, %c0_i32_0 : i32, i32
  }
  func.func @transform_5(%arg0: i32) -> (i32, i32) {
    %c0_i32 = arith.constant 0 : i32
    %c0_i32_0 = arith.constant 0 : i32
    %c0_i32_1 = arith.constant 0 : i32
    return %c0_i32, %c0_i32_0 : i32, i32
  }
  func.func @transform_6(%arg0: i32) -> (i32, i32) {
    %c0_i32 = arith.constant 0 : i32
    %c0_i32_0 = arith.constant 0 : i32
    %c0_i32_1 = arith.constant 0 : i32
    return %c0_i32, %c0_i32_0 : i32, i32
  }
  func.func @transform_7(%arg0: i32) -> (i32, i32) {
    %c0_i32 = arith.constant 0 : i32
    %c0_i32_0 = arith.constant 0 : i32
    %c0_i32_1 = arith.constant 0 : i32
    return %c0_i32, %c0_i32_0 : i32, i32
  }
  func.func @transform_8(%arg0: i32) -> (i32, i32) {
    %c0_i32 = arith.constant 0 : i32
    %c0_i32_0 = arith.constant 0 : i32
    %c0_i32_1 = arith.constant 0 : i32
    return %c0_i32, %c0_i32_0 : i32, i32
  }
  func.func @transform_9(%arg0: i32) -> (i32, i32) {
    %c0_i32 = arith.constant 0 : i32
    %c0_i32_0 = arith.constant 0 : i32
    return %c0_i32, %arg0 : i32, i32
  }
}

</mosaic_0001>

<bundles_post_ra>
// kernel: mlp_forward.1
= control target key start
LH: loop header
LB: loop body
LE: loop exit
PB: predicated region body
PF: predicated region fallthrough
CT: control target
= control target key end

     0   :  { %vm62_vm0 = vcmask 130048   ;;  %v515_v3 = vmov 0   ;;  %vm182_vm1 = vcmask 261120   ;;  %v516_v40 = vmov 0.0|0.0   ;;  %s633_s0 = inlined_call_operand.vmem [shape: f32[16,128], index: 0, kind: input, shape index: {}]   ;;  %s634_s1 = inlined_call_operand.vmem [shape: f32[32,16], index: 1, kind: input, shape index: {}]   ;;  %s635_s2 = inlined_call_operand.vmem [shape: f32[32,1], index: 2, kind: input, shape index: {}]   ;;  %s636_s4 = inlined_call_operand.vmem [shape: f32[16,1], index: 4, kind: input, shape index: {}]   ;;  %s637_s6 = inlined_call_operand.vmem [shape: f32[8,1], index: 6, kind: input, shape index: {}]   ;;  %s638_s8 = inlined_call_operand.vmem [shape: f32[4,1], index: 8, kind: input, shape index: {}]   ;;  %s639_s3 = inlined_call_operand.vmem [shape: f32[16,32], index: 3, kind: input, shape index: {}]   ;;  %s640_s5 = inlined_call_operand.vmem [shape: f32[8,16], index: 5, kind: input, shape index: {}]   ;;  %s641_s7 = inlined_call_operand.vmem [shape: f32[4,8], index: 7, kind: input, shape index: {}]   ;;  %s642_s9 = inlined_call_operand.vmem [shape: f32[4,128], index: 9, kind: output, shape index: {}]  }
   0x1   :  { %v32_v0 = vld [vmem:[%s633_s0] sm:$0xff]  ;;  %v33_v1 = vld [vmem:[%s633_s0 + $0x8] sm:$0xff]  ;;  %513 = vset.pattern.permute.xlu0 %v515_v3  ;;  %514 = vset.pattern.permute.xlu1 %v515_v3  ;;  %v40_v6 = vld [vmem:[%s635_s2 + $0x10] sm:$0xff]  ;;  %vm517_vm2 = vmmov 0   ;;  %v518_v41 = vmov 0.0   ;;  %vm357_vm3 = vcmask 64512  }
   0x2   :  { %v34_v2 = vld [vmem:[%s634_s1] sm:$0xff]  ;;  %v494_v4 = vpack.c.bf16 %v33_v1, %v32_v0  ;;  %v35_v7 = vld [vmem:[%s634_s1 + $0x8] sm:$0xff]  ;;  %54 = vperm.xlu1 %514, %v40_v6   ;;  %v36_v9 = vld [vmem:[%s634_s1 + $0x10] sm:$0xff] }
   0x3   :  { %465 = vmatprep.mubr.msk.f32.mxu0 %vm62_vm0, %v34_v2  ;;  %v38_v5 = vld [vmem:[%s635_s2] sm:$0xff]  ;;  %v39_v8 = vld [vmem:[%s635_s2 + $0x8] sm:$0xff]  ;;  %v41_v10 = vld [vmem:[%s635_s2 + $0x18] sm:$0xff] }
   0x4   :  { %495 = vmatprep.subr.bf16.mxu0 %v494_v4  ;;  %44 = vperm.xlu0 %513, %v38_v5   ;;  %v37_v11 = vld [vmem:[%s634_s1 + $0x18] sm:$0xff]  ;;  %v170_v12 = vld [vmem:[%s636_s4] sm:$0xff]  ;;  %v171_v13 = vld [vmem:[%s636_s4 + $0x8] sm:$0xff] }
   0x5   :  { %497 = vmatpush3.bf16.msra.mxu0 %v494_v4  ;;  %v269_v14 = vld [vmem:[%s637_s6] sm:$0xff]  ;;  %v169_v39 = vld [vmem:[%s639_s3 + $0x8] sm:$0xff] }
   0x6   :  { %59 = vperm.xlu1 %514, %v41_v10   ;;  %v351_v15 = vld [vmem:[%s638_s8] sm:$0xf]  ;;  %506 = vmatprep.subr.bf16.mxu0 %v516_v40 }
   0x7   :  { %v168_v16 = vld [vmem:[%s639_s3] sm:$0xff] }
   0x8   :  { %466 = vmatmul.mubr.msk.f32.vlgmr.msra.gmra.mrb[0].mxu0 %vm62_vm0, %v35_v7  ;;  %49 = vperm.xlu0 %513, %v39_v8   ;;  %v268_v53 = vld [vmem:[%s640_s5] sm:$0xff] }
   0x9   :  { %468 = vmatprep.mubr.msk.f32.mxu0 %vm62_vm0, %v36_v9  ;;  %479 = vmatprep.mubr.msk.f32.mxu1 %vm182_vm1, %v168_v16  ;;  %v350_v60 = vld [vmem:[%s641_s7] sm:$0xf] }
   0xa   :  { %179 = vperm.xlu1 %514, %v171_v13  }
   0xc   :  { %469 = vmatmul.mubr.msk.f32.gmra.mrb[2].mxu0 %vm62_vm0, %v37_v11  ;;  %174 = vperm.xlu0 %513, %v170_v12  }
   0xd   :  { %486 = vmatprep.mubr.msk.f32.mxu0 %vm517_vm2, %v518_v41 }
   0xe   :  { %354 = vperm.xlu1 %514, %v351_v15  }
  0x10   :  { %272 = vperm.xlu0 %513, %v269_v14  }
  0x81   :  { %v55_v18 = vpop.permute.xlu1 %54 }
  0x83   :  { %v45_v17 = vpop.permute.xlu0 %44 }
  0x85   :  { %v60_v25 = vpop.permute.xlu1 %59 }
  0x87   :  { %v50_v19 = vpop.permute.xlu0 %49 }
  0x89   :  { %v180_v42 = vpop.permute.xlu1 %179 }
  0x8b   :  { %v175_v44 = vpop.permute.xlu0 %174 }
  0x8d   :  { %v355_v61 = vpop.permute.xlu1 %354 }
  0x8f   :  { %v273_v54 = vpop.permute.xlu0 %272 }
  0xdb   :  { %v467_v20 = vpop.f32.mrb[0].mxu0 }
  0xdc   :  { %v147_v21 = vadd.f32 %v467_v20, %v50_v19  ;;  %v141_v22 = vpop.f32.mrb[1].mxu0 }
  0xdd   :  { %v142_v23 = vadd.f32 %v141_v22, %v45_v17 }
  0xde   :  { %v161_v24 = vmul.f32 0.01, %v147_v21 }
  0xdf   :  { %v160_v26 = vmul.f32 0.01, %v142_v23  ;;  %v470_v27 = vpop.f32.mrb[2].mxu0 }
  0xe0   :  { %v165_v28 = vmax.f32 %v147_v21, %v161_v24  ;;  %v157_v29 = vadd.f32 %v470_v27, %v60_v25  ;;  %v151_v30 = vpop.f32.mrb[3].mxu0 }
  0xe1   :  { %v164_v31 = vmax.f32 %v142_v23, %v160_v26  ;;  %v152_v32 = vadd.f32 %v151_v30, %v55_v18 }
  0xe2   :  { %v163_v33 = vmul.f32 0.01, %v157_v29 }
  0xe3   :  { %v162_v34 = vmul.f32 0.01, %v152_v32  ;;  %v498_v35 = vpack.c.bf16 %v165_v28, %v164_v31 }
  0xe4   :  { %v167_v36 = vmax.f32 %v157_v29, %v163_v33 }
  0xe5   :  { %v166_v37 = vmax.f32 %v152_v32, %v162_v34  ;;  %499 = vmatprep.subr.bf16.mxu1 %v498_v35 }
  0xe6   :  { %501 = vmatpush3.bf16.msra.mxu1 %v498_v35 }
  0xe7   :  { %v502_v38 = vpack.c.bf16 %v167_v36, %v166_v37 }
  0xe9   :  { %503 = vmatprep.subr.bf16.mxu1 %v502_v38 }
  0xea   :  { %505 = vmatpush3.bf16.msra.mxu1 %v502_v38 }
  0xeb   :  { %489 = vmatprep.subr.mxu1 %v518_v41 }
  0xed   :  { %480 = vmatmul.mubr.msk.f32.vlgmr.msra.gmra.mrb[0].mxu1 %vm182_vm1, %v169_v39 }
  0xee   :  { %491 = vmatprep.mubr.msk.f32.mxu1 %vm517_vm2, %v518_v41 }
 0x1c0   :  { %v481_v43 = vpop.f32.mrb[0].mxu1 }
 0x1c1   :  { %v261_v45 = vadd.f32 %v481_v43, %v180_v42  ;;  %v255_v46 = vpop.f32.mrb[1].mxu1 }
 0x1c2   :  { %v256_v47 = vadd.f32 %v255_v46, %v175_v44 }
 0x1c3   :  { %v265_v48 = vmul.f32 0.01, %v261_v45 }
 0x1c4   :  { %v264_v49 = vmul.f32 0.01, %v256_v47 }
 0x1c5   :  { %v267_v50 = vmax.f32 %v261_v45, %v265_v48 }
 0x1c6   :  { %v266_v51 = vmax.f32 %v256_v47, %v264_v49 }
 0x1c8   :  { %v507_v52 = vpack.c.bf16 %v267_v50, %v266_v51 }
 0x1ca   :  { %508 = vmatpush3.bf16.msra.mxu0 %v507_v52 }
 0x1cd   :  { %487 = vmatmul.mubr.msk.f32.vlgmr.msra.gmra.mrb[4].mxu0 %vm62_vm0, %v268_v53 }
 0x2a0   :  { %v344_v55 = vpop.f32.mrb[4].mxu0 }
 0x2a1   :  { %v345_v56 = vadd.f32 %v344_v55, %v273_v54  ;;  %v488_v57 = vpop.f32.mrb[5].mxu0 }
 0x2a3   :  { %v348_v58 = vmul.f32 0.01, %v345_v56 }
 0x2a5   :  { %v349_v59 = vmax.f32 %v345_v56, %v348_v58 }
 0x2a7   :  { %490 = vmatpush3.msra.mxu1 %v349_v59 }
 0x2a8   :  { %492 = vmatmul.mubr.msk.f32.vlgmr.msra.gmra.mrb[2].mxu1 %vm357_vm3, %v350_v60 }
 0x37b   :  { %v427_v62 = vpop.f32.mrb[2].mxu1 }
 0x37c   :  { %v428_v63 = vadd.f32 %v427_v62, %v355_v61  ;;  %v493_v0 = vpop.f32.mrb[3].mxu1 }
 0x37e   :  { %431 = vst [vmem:[%s642_s9] sm:$0xf] %v428_v63 }

</bundles_post_ra>
